<compile_context>
chip_gen: v7x
topology: tpu7x:2x2x1
jax: 0.10.0
libtpu: 0.0.40
codegen_flags: <defaults>
</compile_context>

<pallas_src>
import math
import numpy as np
import jax
import jax.numpy as jnp
from jax.experimental import pallas as pl
from jax.experimental.pallas import tpu as pltpu

# --- synthetic "cfg" ---------------------------------------------------------
VOCAB = 64
SEQ = 8
EMB_DIM = 32          # cfg.text_embedding_dim
FFN_DIM = 64
BATCH = 2
MIXED_PRECISION = False   # non-AMP branch -> sigmoid(self.out(output))

GROUP_B = BATCH               # sequences processed per grid step
N_TOK = GROUP_B * SEQ         # flattened tokens per grid step
NUM_GROUPS = BATCH // GROUP_B # grid extent (=1 at these toy shapes)

_INV_SQRT_D = 1.0 / math.sqrt(EMB_DIM)
_NEG = np.float32(-1e30)

# --- trace-time constants (no runtime iota/div/compare in the kernel) --------
_seq_of_tok = np.arange(N_TOK) // SEQ
# additive block-diagonal bias: 0 inside own sequence, -1e30 across sequences
_ATTN_BIAS = np.where(np.equal.outer(_seq_of_tok, _seq_of_tok),
                      np.float32(0.0), _NEG).astype(np.float32)       # (N, N)
# pooling selector: row g picks the tokens of sequence g
_POOL_SEL = np.equal.outer(np.arange(GROUP_B),
                           _seq_of_tok).astype(np.float32)            # (G, N)


def nlp_kernel(ids_ref, mask_ref, bias_ref, poolsel_ref, emb_ref, wqkv_ref,
               wo_ref, w1_ref, b1_ref, w2_ref, b2_ref, wout_ref, bout_ref,
               o_ref):
    """One grid step: GROUP_B sequences, flattened to (N_TOK, D)."""
    ids = ids_ref[...]                                   # (N, 1) int32
    key_valid = mask_ref[...] > 0                        # (1, N) bool
    maskf = key_valid.astype(jnp.float32)                # (1, N)

    # ---- embedding lookup as one-hot @ table (MXU, no external gather) ----
    vocab_iota = jax.lax.broadcasted_iota(jnp.int32, (N_TOK, VOCAB), 1)
    one_hot = (vocab_iota == ids).astype(jnp.float32)    # (N, V)
    x = jnp.dot(one_hot, emb_ref[...],
                preferred_element_type=jnp.float32)      # (N, D)

    # ---- fused QKV projection: one (N, D) @ (D, 3D) push ----
    qkv = jnp.dot(x, wqkv_ref[...], preferred_element_type=jnp.float32)
    q = qkv[:, :EMB_DIM]
    k = qkv[:, EMB_DIM:2 * EMB_DIM]
    v = qkv[:, 2 * EMB_DIM:]

    # ---- single-head self-attention (block-diag const keeps sequences apart)
    scores = jnp.einsum('qd,kd->qk', q, k,
                        preferred_element_type=jnp.float32)           # (N, N)
    scores = scores * _INV_SQRT_D + bias_ref[...]
    scores = jnp.where(key_valid, scores, _NEG)          # padded keys masked

    m = jnp.max(scores, axis=-1, keepdims=True)
    p = jnp.exp(scores - m)
    p = p / jnp.sum(p, axis=-1, keepdims=True)           # exact (parity)

    attn = jnp.dot(p, v, preferred_element_type=jnp.float32)          # (N, D)
    h = jnp.dot(attn, wo_ref[...], preferred_element_type=jnp.float32) + x

    # ---- feed-forward + residual ----
    ff = jnp.maximum(
        jnp.dot(h, w1_ref[...], preferred_element_type=jnp.float32) + b1_ref[...],
        0.0)
    h2 = jnp.dot(ff, w2_ref[...], preferred_element_type=jnp.float32) \
        + b2_ref[...] + h                                              # (N, D)

    # ---- masked mean pooling: constant selector * runtime mask ----
    pool = poolsel_ref[...] * maskf                       # (G, N)
    pooled = jnp.dot(pool, h2, preferred_element_type=jnp.float32)    # (G, D)
    counts = jnp.sum(pool, axis=-1, keepdims=True)        # (G, 1)
    pooled = pooled / jnp.maximum(counts, 1.0)            # exact divide

    # ---- self.out = nn.Linear(D, 1); lane-dense (1, G) logits ----
    logit = jnp.einsum('od,gd->og', wout_ref[...], pooled,
                       preferred_element_type=jnp.float32) + bout_ref[0, 0]
    if MIXED_PRECISION:
        o_ref[...] = logit
    else:
        o_ref[...] = jax.nn.sigmoid(logit)


def _full_spec(shape):
    # whole-array block, same for every grid step
    return pl.BlockSpec(shape, lambda g: (0, 0))


def nlp_forward(ids_flat, mask_flat, params):
    """ids_flat: (B*S, 1) int32 token ids (row-major flatten of (B, S)).
    mask_flat: (1, B*S) int32 attention mask.
    Returns lane-dense (1, B) sigmoid outputs; out[0, b] == PyTorch out[b, 0].
    No wrapper-side glue ops: everything happens inside the pallas_call."""
    emb, wqkv, wo, w1, b1, w2, b2, wout, bout = params

    grid_spec = pltpu.PrefetchScalarGridSpec(
        num_scalar_prefetch=0,
        grid=(NUM_GROUPS,),
        in_specs=[
            pl.BlockSpec((N_TOK, 1), lambda g: (g, 0)),        # ids (per group)
            pl.BlockSpec((1, N_TOK), lambda g: (0, g)),        # mask (per group)
            _full_spec(_ATTN_BIAS.shape),                      # block-diag bias
            _full_spec(_POOL_SEL.shape),                       # pooling selector
            _full_spec(emb.shape),                             # embedding table
            _full_spec(wqkv.shape),                            # fused QKV
            _full_spec(wo.shape),
            _full_spec(w1.shape),
            _full_spec(b1.shape),
            _full_spec(w2.shape),
            _full_spec(b2.shape),
            _full_spec(wout.shape),
            pl.BlockSpec(memory_space=pltpu.MemorySpace.SMEM), # bout scalar
        ],
        out_specs=pl.BlockSpec((1, GROUP_B), lambda g: (0, g)),
    )

    return pl.pallas_call(
        nlp_kernel,
        out_shape=jax.ShapeDtypeStruct((1, BATCH), jnp.float32),
        grid_spec=grid_spec,
        # batch-group axis; only matters on v7x once per-step work is >= a few us
        compiler_params=pltpu.CompilerParams(
            dimension_semantics=("parallel",)),
    )(ids_flat, mask_flat, _ATTN_BIAS, _POOL_SEL,
      emb, wqkv, wo, w1, b1, w2, b2, wout, bout)


def init_params(key):
    ks = jax.random.split(key, 8)
    scale = 0.05
    emb  = scale * jax.random.normal(ks[0], (VOCAB, EMB_DIM), jnp.float32)
    wq   = scale * jax.random.normal(ks[1], (EMB_DIM, EMB_DIM), jnp.float32)
    wk   = scale * jax.random.normal(ks[2], (EMB_DIM, EMB_DIM), jnp.float32)
    wv   = scale * jax.random.normal(ks[3], (EMB_DIM, EMB_DIM), jnp.float32)
    wo   = scale * jax.random.normal(ks[4], (EMB_DIM, EMB_DIM), jnp.float32)
    w1   = scale * jax.random.normal(ks[5], (EMB_DIM, FFN_DIM), jnp.float32)
    b1   = jnp.zeros((1, FFN_DIM), jnp.float32)
    w2   = scale * jax.random.normal(ks[6], (FFN_DIM, EMB_DIM), jnp.float32)
    b2   = jnp.zeros((1, EMB_DIM), jnp.float32)
    wout = scale * jax.random.normal(ks[7], (1, EMB_DIM), jnp.float32)  # (out,in)
    bout = jnp.zeros((1, 1), jnp.float32)
    # Pre-fuse Q/K/V ONCE here (not per forward call).
    wqkv = jnp.concatenate([wq, wk, wv], axis=1)                        # (D, 3D)
    return (emb, wqkv, wo, w1, b1, w2, b2, wout, bout)


if __name__ == "__main__":
    key = jax.random.PRNGKey(0)
    pkey, dkey = jax.random.split(key)
    params = init_params(pkey)

    input_ids = jax.random.randint(dkey, (BATCH, SEQ), 0, VOCAB, dtype=jnp.int32)
    # first sequence fully valid, second has 3 padding tokens at the end
    attention_mask = jnp.array(
        [[1] * SEQ,
         [1] * (SEQ - 3) + [0] * 3], dtype=jnp.int32)

    # One-time data prep OUTSIDE the jitted hot path (pure views of the (B,S)
    # tensors) -> the jitted forward dispatches exactly one op: the kernel.
    ids_flat = input_ids.reshape(BATCH * SEQ, 1)
    mask_flat = attention_mask.reshape(1, BATCH * SEQ)

    fwd = jax.jit(nlp_forward)
    out = jax.block_until_ready(fwd(ids_flat, mask_flat, params))

    assert out.shape == (1, BATCH)                      # lane-dense logits
    assert bool(jnp.all(jnp.isfinite(out)))
    assert bool(jnp.all((out > 0.0) & (out < 1.0)))     # sigmoid range
    print("KERNEL_OK")
</pallas_src>

<mosaic_0001>
module attributes {stable_mosaic.version = 11 : i64} {
  func.func @nlp_kernel(%arg0: i32, %arg1: memref<16x1xi32, #tpu.memory_space<vmem>>, %arg2: memref<1x16xi32, #tpu.memory_space<vmem>>, %arg3: memref<16x16xf32, #tpu.memory_space<vmem>>, %arg4: memref<2x16xf32, #tpu.memory_space<vmem>>, %arg5: memref<64x32xf32, #tpu.memory_space<vmem>>, %arg6: memref<32x96xf32, #tpu.memory_space<vmem>>, %arg7: memref<32x32xf32, #tpu.memory_space<vmem>>, %arg8: memref<32x64xf32, #tpu.memory_space<vmem>>, %arg9: memref<1x64xf32, #tpu.memory_space<vmem>>, %arg10: memref<64x32xf32, #tpu.memory_space<vmem>>, %arg11: memref<1x32xf32, #tpu.memory_space<vmem>>, %arg12: memref<1x32xf32, #tpu.memory_space<vmem>>, %arg13: memref<1x1xf32, #tpu.memory_space<smem>>, %arg14: memref<1x2xf32, #tpu.memory_space<vmem>>) attributes {dimension_semantics = [#tpu.dimension_semantics<parallel>], iteration_bounds = array<i64: 1>, scalar_prefetch = 0 : i64, scratch_operands = 0 : i64, tpu.core_type = #tpu.core_type<tc>, window_params = [{transform_indices = @transform_0, window_bounds = array<i64: 16, 1>}, {transform_indices = @transform_1, window_bounds = array<i64: 1, 16>}, {pipeline_mode = #tpu.pipeline_mode<synchronous>, transform_indices = @transform_2, window_bounds = array<i64: 16, 16>}, {pipeline_mode = #tpu.pipeline_mode<synchronous>, transform_indices = @transform_3, window_bounds = array<i64: 2, 16>}, {pipeline_mode = #tpu.pipeline_mode<synchronous>, transform_indices = @transform_4, window_bounds = array<i64: 64, 32>}, {pipeline_mode = #tpu.pipeline_mode<synchronous>, transform_indices = @transform_5, window_bounds = array<i64: 32, 96>}, {pipeline_mode = #tpu.pipeline_mode<synchronous>, transform_indices = @transform_6, window_bounds = array<i64: 32, 32>}, {pipeline_mode = #tpu.pipeline_mode<synchronous>, transform_indices = @transform_7, window_bounds = array<i64: 32, 64>}, {pipeline_mode = #tpu.pipeline_mode<synchronous>, transform_indices = @transform_8, window_bounds = array<i64: 1, 64>}, {pipeline_mode = #tpu.pipeline_mode<synchronous>, transform_indices = @transform_9, window_bounds = array<i64: 64, 32>}, {pipeline_mode = #tpu.pipeline_mode<synchronous>, transform_indices = @transform_10, window_bounds = array<i64: 1, 32>}, {pipeline_mode = #tpu.pipeline_mode<synchronous>, transform_indices = @transform_11, window_bounds = array<i64: 1, 32>}, {transform_indices = @transform_12, window_bounds = array<i64: 1, 1>}, {transform_indices = @transform_13, window_bounds = array<i64: 1, 2>}]} {
    %c0 = arith.constant 0 : index
    %c0_0 = arith.constant 0 : index
    %0 = vector.load %arg1[%c0, %c0_0] : memref<16x1xi32, #tpu.memory_space<vmem>>, vector<16x1xi32>
    %c0_1 = arith.constant 0 : index
    %c0_2 = arith.constant 0 : index
    %1 = vector.load %arg2[%c0_1, %c0_2] : memref<1x16xi32, #tpu.memory_space<vmem>>, vector<1x16xi32>
    %c0_i32 = arith.constant 0 : i32
    %2 = vector.broadcast %c0_i32 : i32 to vector<1x16xi32>
    %3 = arith.cmpi sgt, %1, %2 : vector<1x16xi32>
    %4 = arith.extui %3 : vector<1x16xi1> to vector<1x16xi32>
    %5 = arith.sitofp %4 : vector<1x16xi32> to vector<1x16xf32>
    %6 = tpu.iota {dimensions = array<i32: 1>} : vector<16x64xi32>
    %7 = vector.broadcast %0 : vector<16x1xi32> to vector<16x64xi32>
    %8 = arith.cmpi eq, %6, %7 : vector<16x64xi32>
    %9 = arith.extui %8 : vector<16x64xi1> to vector<16x64xi32>
    %10 = arith.sitofp %9 : vector<16x64xi32> to vector<16x64xf32>
    %c0_3 = arith.constant 0 : index
    %c0_4 = arith.constant 0 : index
    %11 = vector.load %arg5[%c0_3, %c0_4] : memref<64x32xf32, #tpu.memory_space<vmem>>, vector<64x32xf32>
    %cst = arith.constant dense<0.000000e+00> : vector<16x32xf32>
    %12 = tpu.matmul %10, %11, %cst {dimension_numbers = #tpu.dot_dimension_numbers<[1], [0], [0], [1], [0, 0, 1, 1], [], []>} : vector<16x64xf32>, vector<64x32xf32>, vector<16x32xf32> -> vector<16x32xf32>
    %c0_5 = arith.constant 0 : index
    %c0_6 = arith.constant 0 : index
    %13 = vector.load %arg6[%c0_5, %c0_6] : memref<32x96xf32, #tpu.memory_space<vmem>>, vector<32x96xf32>
    %cst_7 = arith.constant dense<0.000000e+00> : vector<16x96xf32>
    %14 = tpu.matmul %12, %13, %cst_7 {dimension_numbers = #tpu.dot_dimension_numbers<[1], [0], [0], [1], [0, 0, 1, 1], [], []>} : vector<16x32xf32>, vector<32x96xf32>, vector<16x96xf32> -> vector<16x96xf32>
    %15 = vector.extract_strided_slice %14 {offsets = [0, 0], sizes = [16, 32], strides = [1, 1]} : vector<16x96xf32> to vector<16x32xf32>
    %16 = vector.extract_strided_slice %14 {offsets = [0, 32], sizes = [16, 32], strides = [1, 1]} : vector<16x96xf32> to vector<16x32xf32>
    %17 = vector.extract_strided_slice %14 {offsets = [0, 64], sizes = [16, 32], strides = [1, 1]} : vector<16x96xf32> to vector<16x32xf32>
    "tpu.trace_start"() <{level = 10 : i32, message = "qd,kd->qk"}> : () -> ()
    %cst_8 = arith.constant dense<0.000000e+00> : vector<16x16xf32>
    %18 = tpu.matmul %15, %16, %cst_8 {dimension_numbers = #tpu.dot_dimension_numbers<[1], [1], [0], [0], [0, 0, 1, 0], [], []>} : vector<16x32xf32>, vector<16x32xf32>, vector<16x16xf32> -> vector<16x16xf32>
    "tpu.trace_stop"() : () -> ()
    %cst_9 = arith.constant 0.176776692 : f32
    %19 = vector.broadcast %cst_9 : f32 to vector<16x16xf32>
    %20 = arith.mulf %18, %19 : vector<16x16xf32>
    %c0_10 = arith.constant 0 : index
    %c0_11 = arith.constant 0 : index
    %21 = vector.load %arg3[%c0_10, %c0_11] : memref<16x16xf32, #tpu.memory_space<vmem>>, vector<16x16xf32>
    %22 = arith.addf %20, %21 : vector<16x16xf32>
    %cst_12 = arith.constant -1.000000e+30 : f32
    %23 = vector.shape_cast %3 : vector<1x16xi1> to vector<1x16xi1>
    %24 = vector.broadcast %23 : vector<1x16xi1> to vector<16x16xi1>
    %25 = vector.broadcast %cst_12 : f32 to vector<16x16xf32>
    %26 = arith.select %24, %22, %25 : vector<16x16xi1>, vector<16x16xf32>
    %cst_13 = arith.constant dense<0xFF800000> : vector<16xf32>
    %27 = vector.multi_reduction <maximumf>, %26, %cst_13 [1] : vector<16x16xf32> to vector<16xf32>
    %28 = vector.shape_cast %27 : vector<16xf32> to vector<16x1xf32>
    %29 = vector.broadcast %28 : vector<16x1xf32> to vector<16x16xf32>
    %30 = arith.subf %26, %29 : vector<16x16xf32>
    %31 = math.exp %30 : vector<16x16xf32>
    %cst_14 = arith.constant dense<0.000000e+00> : vector<16xf32>
    %32 = vector.multi_reduction <add>, %31, %cst_14 [1] : vector<16x16xf32> to vector<16xf32>
    %33 = vector.shape_cast %32 : vector<16xf32> to vector<16x1xf32>
    %34 = vector.broadcast %33 : vector<16x1xf32> to vector<16x16xf32>
    %35 = arith.divf %31, %34 : vector<16x16xf32>
    %cst_15 = arith.constant dense<0.000000e+00> : vector<16x32xf32>
    %36 = tpu.matmul %35, %17, %cst_15 {dimension_numbers = #tpu.dot_dimension_numbers<[1], [0], [0], [1], [0, 0, 1, 1], [], []>} : vector<16x16xf32>, vector<16x32xf32>, vector<16x32xf32> -> vector<16x32xf32>
    %c0_16 = arith.constant 0 : index
    %c0_17 = arith.constant 0 : index
    %37 = vector.load %arg7[%c0_16, %c0_17] : memref<32x32xf32, #tpu.memory_space<vmem>>, vector<32x32xf32>
    %cst_18 = arith.constant dense<0.000000e+00> : vector<16x32xf32>
    %38 = tpu.matmul %36, %37, %cst_18 {dimension_numbers = #tpu.dot_dimension_numbers<[1], [0], [0], [1], [0, 0, 1, 1], [], []>} : vector<16x32xf32>, vector<32x32xf32>, vector<16x32xf32> -> vector<16x32xf32>
    %39 = arith.addf %38, %12 : vector<16x32xf32>
    %c0_19 = arith.constant 0 : index
    %c0_20 = arith.constant 0 : index
    %40 = vector.load %arg8[%c0_19, %c0_20] : memref<32x64xf32, #tpu.memory_space<vmem>>, vector<32x64xf32>
    %cst_21 = arith.constant dense<0.000000e+00> : vector<16x64xf32>
    %41 = tpu.matmul %39, %40, %cst_21 {dimension_numbers = #tpu.dot_dimension_numbers<[1], [0], [0], [1], [0, 0, 1, 1], [], []>} : vector<16x32xf32>, vector<32x64xf32>, vector<16x64xf32> -> vector<16x64xf32>
    %c0_22 = arith.constant 0 : index
    %c0_23 = arith.constant 0 : index
    %42 = vector.load %arg9[%c0_22, %c0_23] : memref<1x64xf32, #tpu.memory_space<vmem>>, vector<1x64xf32>
    %43 = vector.broadcast %42 : vector<1x64xf32> to vector<16x64xf32>
    %44 = arith.addf %41, %43 : vector<16x64xf32>
    %cst_24 = arith.constant 0.000000e+00 : f32
    %45 = vector.broadcast %cst_24 : f32 to vector<16x64xf32>
    %46 = arith.maximumf %44, %45 : vector<16x64xf32>
    %c0_25 = arith.constant 0 : index
    %c0_26 = arith.constant 0 : index
    %47 = vector.load %arg10[%c0_25, %c0_26] : memref<64x32xf32, #tpu.memory_space<vmem>>, vector<64x32xf32>
    %cst_27 = arith.constant dense<0.000000e+00> : vector<16x32xf32>
    %48 = tpu.matmul %46, %47, %cst_27 {dimension_numbers = #tpu.dot_dimension_numbers<[1], [0], [0], [1], [0, 0, 1, 1], [], []>} : vector<16x64xf32>, vector<64x32xf32>, vector<16x32xf32> -> vector<16x32xf32>
    %c0_28 = arith.constant 0 : index
    %c0_29 = arith.constant 0 : index
    %49 = vector.load %arg11[%c0_28, %c0_29] : memref<1x32xf32, #tpu.memory_space<vmem>>, vector<1x32xf32>
    %50 = vector.broadcast %49 : vector<1x32xf32> to vector<16x32xf32>
    %51 = arith.addf %48, %50 : vector<16x32xf32>
    %52 = arith.addf %51, %39 : vector<16x32xf32>
    %c0_30 = arith.constant 0 : index
    %c0_31 = arith.constant 0 : index
    %53 = vector.load %arg4[%c0_30, %c0_31] : memref<2x16xf32, #tpu.memory_space<vmem>>, vector<2x16xf32>
    %54 = vector.broadcast %5 : vector<1x16xf32> to vector<2x16xf32>
    %55 = arith.mulf %53, %54 : vector<2x16xf32>
    %cst_32 = arith.constant dense<0.000000e+00> : vector<2x32xf32>
    %56 = tpu.matmul %55, %52, %cst_32 {dimension_numbers = #tpu.dot_dimension_numbers<[1], [0], [0], [1], [0, 0, 1, 1], [], []>} : vector<2x16xf32>, vector<16x32xf32>, vector<2x32xf32> -> vector<2x32xf32>
    %cst_33 = arith.constant dense<0.000000e+00> : vector<2xf32>
    %57 = vector.multi_reduction <add>, %55, %cst_33 [1] : vector<2x16xf32> to vector<2xf32>
    %58 = vector.shape_cast %57 : vector<2xf32> to vector<2x1xf32>
    %cst_34 = arith.constant 1.000000e+00 : f32
    %59 = vector.broadcast %cst_34 : f32 to vector<2x1xf32>
    %60 = arith.maximumf %58, %59 : vector<2x1xf32>
    %61 = vector.broadcast %60 : vector<2x1xf32> to vector<2x32xf32>
    %62 = arith.divf %56, %61 : vector<2x32xf32>
    %c0_35 = arith.constant 0 : index
    %c0_36 = arith.constant 0 : index
    %63 = vector.load %arg12[%c0_35, %c0_36] : memref<1x32xf32, #tpu.memory_space<vmem>>, vector<1x32xf32>
    "tpu.trace_start"() <{level = 10 : i32, message = "od,gd->og"}> : () -> ()
    %cst_37 = arith.constant dense<0.000000e+00> : vector<1x2xf32>
    %64 = tpu.matmul %63, %62, %cst_37 {dimension_numbers = #tpu.dot_dimension_numbers<[1], [1], [0], [0], [0, 0, 1, 0], [], []>} : vector<1x32xf32>, vector<2x32xf32>, vector<1x2xf32> -> vector<1x2xf32>
    "tpu.trace_stop"() : () -> ()
    %c0_38 = arith.constant 0 : index
    %c0_39 = arith.constant 0 : index
    %65 = memref.load %arg13[%c0_38, %c0_39] : memref<1x1xf32, #tpu.memory_space<smem>>
    %66 = vector.broadcast %65 : f32 to vector<1x2xf32>
    %67 = arith.addf %64, %66 : vector<1x2xf32>
    %68 = arith.negf %67 : vector<1x2xf32>
    %69 = math.exp %68 : vector<1x2xf32>
    %cst_40 = arith.constant 1.000000e+00 : f32
    %70 = vector.broadcast %cst_40 : f32 to vector<1x2xf32>
    %71 = arith.addf %70, %69 : vector<1x2xf32>
    %72 = arith.divf %70, %71 : vector<1x2xf32>
    %c0_41 = arith.constant 0 : index
    %c0_42 = arith.constant 0 : index
    %73 = vector.load %arg14[%c0_41, %c0_42] : memref<1x2xf32, #tpu.memory_space<vmem>>, vector<1x2xf32>
    tpu.vector_store %arg14[%c0_41, %c0_42], %72 {strides = array<i32>} : memref<1x2xf32, #tpu.memory_space<vmem>>, vector<1x2xf32>,
    return
  }
  func.func @transform_0(%arg0: i32) -> (i32, i32) {
    %c0_i32 = arith.constant 0 : i32
    %c0_i32_0 = arith.constant 0 : i32
    return %arg0, %c0_i32 : i32, i32
  }
  func.func @transform_1(%arg0: i32) -> (i32, i32) {
    %c0_i32 = arith.constant 0 : i32
    %c0_i32_0 = arith.constant 0 : i32
    return %c0_i32, %arg0 : i32, i32
  }
  func.func @transform_2(%arg0: i32) -> (i32, i32) {
    %c0_i32 = arith.constant 0 : i32
    %c0_i32_0 = arith.constant 0 : i32
    %c0_i32_1 = arith.constant 0 : i32
    return %c0_i32, %c0_i32_0 : i32, i32
  }
  func.func @transform_3(%arg0: i32) -> (i32, i32) {
    %c0_i32 = arith.constant 0 : i32
    %c0_i32_0 = arith.constant 0 : i32
    %c0_i32_1 = arith.constant 0 : i32
    return %c0_i32, %c0_i32_0 : i32, i32
  }
  func.func @transform_4(%arg0: i32) -> (i32, i32) {
    %c0_i32 = arith.constant 0 : i32
    %c0_i32_0 = arith.constant 0 : i32
    %c0_i32_1 = arith.constant 0 : i32
    return %c0_i32, %c0_i32_0 : i32, i32
  }
  func.func @transform_5(%arg0: i32) -> (i32, i32) {
    %c0_i32 = arith.constant 0 : i32
    %c0_i32_0 = arith.constant 0 : i32
    %c0_i32_1 = arith.constant 0 : i32
    return %c0_i32, %c0_i32_0 : i32, i32
  }
  func.func @transform_6(%arg0: i32) -> (i32, i32) {
    %c0_i32 = arith.constant 0 : i32
    %c0_i32_0 = arith.constant 0 : i32
    %c0_i32_1 = arith.constant 0 : i32
    return %c0_i32, %c0_i32_0 : i32, i32
  }
  func.func @transform_7(%arg0: i32) -> (i32, i32) {
    %c0_i32 = arith.constant 0 : i32
    %c0_i32_0 = arith.constant 0 : i32
    %c0_i32_1 = arith.constant 0 : i32
    return %c0_i32, %c0_i32_0 : i32, i32
  }
  func.func @transform_8(%arg0: i32) -> (i32, i32) {
    %c0_i32 = arith.constant 0 : i32
    %c0_i32_0 = arith.constant 0 : i32
    %c0_i32_1 = arith.constant 0 : i32
    return %c0_i32, %c0_i32_0 : i32, i32
  }
  func.func @transform_9(%arg0: i32) -> (i32, i32) {
    %c0_i32 = arith.constant 0 : i32
    %c0_i32_0 = arith.constant 0 : i32
    %c0_i32_1 = arith.constant 0 : i32
    return %c0_i32, %c0_i32_0 : i32, i32
  }
  func.func @transform_10(%arg0: i32) -> (i32, i32) {
    %c0_i32 = arith.constant 0 : i32
    %c0_i32_0 = arith.constant 0 : i32
    %c0_i32_1 = arith.constant 0 : i32
    return %c0_i32, %c0_i32_0 : i32, i32
  }
  func.func @transform_11(%arg0: i32) -> (i32, i32) {
    %c0_i32 = arith.constant 0 : i32
    %c0_i32_0 = arith.constant 0 : i32
    %c0_i32_1 = arith.constant 0 : i32
    return %c0_i32, %c0_i32_0 : i32, i32
  }
  func.func @transform_12(%arg0: i32) -> (i32, i32) {
    %c0_i32 = arith.constant 0 : i32
    %c0_i32_0 = arith.constant 0 : i32
    %c0_i32_1 = arith.constant 0 : i32
    return %c0_i32, %c0_i32_0 : i32, i32
  }
  func.func @transform_13(%arg0: i32) -> (i32, i32) {
    %c0_i32 = arith.constant 0 : i32
    %c0_i32_0 = arith.constant 0 : i32
    return %c0_i32, %arg0 : i32, i32
  }
}

</mosaic_0001>

<bundles_post_ra>
// kernel: nlp_forward.1
= control target key start
LH: loop header
LB: loop body
LE: loop exit
PB: predicated region body
PF: predicated region fallthrough
CT: control target
= control target key end

     0   :  { %v52_v0 = vlaneseq  ;;  %v1218_v2 = vmov 0   ;;  %v1219_v10 = vmov 0.0   ;;  %s1466_s0 = inlined_call_operand.vmem [shape: s32[16,1], index: 0, kind: input, shape index: {}]   ;;  %s1467_s1 = inlined_call_operand.vmem [shape: s32[1,16], index: 1, kind: input, shape index: {}]   ;;  %s1468_s2 = inlined_call_operand.vmem [shape: f32[16,16], index: 2, kind: input, shape index: {}]   ;;  %s1469_s3 = inlined_call_operand.vmem [shape: f32[2,16], index: 3, kind: input, shape index: {}]   ;;  %s1470_s4 = inlined_call_operand.vmem [shape: f32[64,32], index: 4, kind: input, shape index: {}]   ;;  %s1471_s5 = inlined_call_operand.vmem [shape: f32[32,96], index: 5, kind: input, shape index: {}]   ;;  %s1472_s6 = inlined_call_operand.vmem [shape: f32[32,32], index: 6, kind: input, shape index: {}]   ;;  %s1473_s7 = inlined_call_operand.vmem [shape: f32[32,64], index: 7, kind: input, shape index: {}]   ;;  %s1474_s8 = inlined_call_operand.vmem [shape: f32[1,64], index: 8, kind: input, shape index: {}]   ;;  %s1475_s9 = inlined_call_operand.vmem [shape: f32[64,32], index: 9, kind: input, shape index: {}]   ;;  %s1476_s10 = inlined_call_operand.vmem [shape: f32[1,32], index: 10, kind: input, shape index: {}]   ;;  %s1477_s11 = inlined_call_operand.vmem [shape: f32[1,32], index: 11, kind: input, shape index: {}]   ;;  %s1478_s12 = inlined_call_operand.<no memory space> [shape: f32[1,1], index: 12, kind: input, shape index: {}]   ;;  %s1479_s13 = inlined_call_operand.hbm [shape: f32[1,2], index: 13, kind: output, shape index: {}]  }
   0x1   :  { %v48_v1 = vld [vmem:[%s1467_s1] sm:$0x1]  ;;  %1169 = vset.pattern.permute.xlu0 %v1218_v2  ;;  %v67_v6 = vld [vmem:[%s1470_s4 + $0x8] sm:$0xff]  ;;  %v68_v7 = vld [vmem:[%s1470_s4 + $0x10] sm:$0xff] }
   0x2   :  { %vm49_vm0 = vcmp.gt.s32.totalorder %v48_v1, 0  ;;  %v46_v3 = vld [vmem:[%s1466_s0] sm:$0xff]  ;;  %v338_v5 = vshrl.u32 %v52_v0, 7  ;;  %v69_v8 = vld [vmem:[%s1470_s4 + $0x18] sm:$0xff]  ;;  %v47_v12 = vld [vmem:[%s1466_s0 + $0x8] sm:$0xff] }
   0x3   :  { %v66_v4 = vld [vmem:[%s1470_s4] sm:$0xff]  ;;  %55 = vperm.xlu0 %1169, %v46_v3   ;;  %v50_v9 = vsel %vm49_vm0, 1, %v1218_v2  ;;  %v920_v11 = vsel %vm49_vm0, 1.0, %v1219_v10  ;;  %v1097_v14 = vpack.c.bf16 %v69_v8, %v68_v7  ;;  %v71_v17 = vld [vmem:[%s1470_s4 + $0x28] sm:$0xff] }
   0x4   :  { %v1093_v13 = vpack.c.bf16 %v67_v6, %v66_v4  ;;  %v339_v15 = vsub.s32 0, %v338_v5  ;;  %v70_v16 = vld [vmem:[%s1470_s4 + $0x20] sm:$0xff] }
   0x5   :  { %19 = vsyncpa [#allocation4], 0  ;;  %v1101_v20 = vpack.c.bf16 %v71_v17, %v70_v16  ;;  %v72_v21 = vld [vmem:[%s1470_s4 + $0x30] sm:$0xff]  ;;  %v73_v22 = vld [vmem:[%s1470_s4 + $0x38] sm:$0xff]  ;;  %v53_v30 = vand.u32 127, %v52_v0  ;;  %vm74_vm1 = vcmask 523264  }
   0x6   :  { %1094 = vmatprep.subr.bf16.mxu0 %v1093_v13  ;;  %v1323_v18 = vrot.slane %v50_v9, %v339_v15  ;;  %v1325_v19 = vrot.slane %v920_v11, %v339_v15  ;;  %v156_v23 = vld [vmem:[%s1471_s5] sm:$0xff]  ;;  %v157_v24 = vld [vmem:[%s1471_s5 + $0x8] sm:$0xff]  ;;  %v158_v25 = vld [vmem:[%s1471_s5 + $0x10] sm:$0xff]  ;;  %v1105_v29 = vpack.c.bf16 %v73_v22, %v72_v21  ;;  %vm160_vm4 = vcmask 261120   ;;  %s1220_s4 = smov 96   ;;  %s1224_s16 = smov [#allocation3]  }
   0x7   :  { %58 = vperm.xlu0 %1169, %v47_v12   ;;  %1096 = vmatpush3.bf16.msra.mxu0 %v1093_v13  ;;  %v1109_v26 = vpack.c.bf16 %v157_v24, %v156_v23  ;;  %v159_v27 = vld [vmem:[%s1471_s5 + $0x18] sm:$0xff]  ;;  %vm1118_vm5 = vmpackc.low %vm160_vm4, %vm160_vm4  ;;  %v334_v45 = vld [vmem:[%s1468_s2 + $0x8] sm:$0xff]  ;;  %vm344_vm7 = vcmask 130048   ;;  %vm1223_vm8 = vmmov 0   ;;  %vm812_vm9 = vcmask 123904   ;;  %s912_s17 = sshll.u32 %s1224_s16, 4  ;;  %s913_s17 = int_to_ptr.vmem [resolvable:$true] %s912_s17 }
   0x8   :  { %1098 = vmatprep.subr.bf16.mxu0 %v1097_v14  ;;  %v1113_v28 = vpack.c.bf16 %v159_v27, %v158_v25  ;;  %v333_v48 = vld [vmem:[%s1468_s2] sm:$0xff]  ;;  %vm341_vm6 = vcmp.eq.s32.totalorder %v1323_v18, 1  ;;  %s1221_s2 = smov 64   ;;  %v455_v3 = vld [vmem:[%s1472_s6 + $0x8] sm:$0xff]  ;;  %v456_v4 = vld [vmem:[%s1472_s6 + $0x10] sm:$0xff]  ;;  %vm904_vm10 = vcmask 8192   ;;  %p1199_p1 = scmp.lt.s32.totalorder %s913_s17, %s913_s17 }
   0x9   :  { %1110 = vmatprep.subr.bf16.mxu1 %v1109_v26  ;;  %v454_v2 = vld [vmem:[%s1472_s6] sm:$0xff]  ;;  %v457_v6 = vld [vmem:[%s1472_s6 + $0x18] sm:$0xff]  ;;  %v540_v21 = vld [vmem:[%s1473_s7 + $0x8] sm:$0xff]  ;;  %s1198_s1 = scalar_lea.vmem %s913_s17, 32 }
   0xa   :  { %1112 = vmatpush3.bf16.msra.mxu1 %v1109_v26  ;;  %v1127_v5 = vpack.c.bf16 %v455_v3, %v454_v2  ;;  %v1131_v7 = vpack.c.bf16 %v457_v6, %v456_v4  ;;  %v541_v25 = vld [vmem:[%s1473_s7 + $0x10] sm:$0xff]  ;;  %v542_v26 = vld [vmem:[%s1473_s7 + $0x18] sm:$0xff]  ;;  %v819_v4 = vld [vmem:[%s1477_s11] sm:$0x1]  ;;  %s1194_s11 = scalar_lea.vmem %s913_s17, 16 }
   0xb   :  { %1100 = vmatpush3.bf16.msra.mxu0 %v1097_v14  ;;  %1114 = vmatprep.subr.bf16.mxu1 %v1113_v28  ;;  %v1139_v27 = vpack.c.bf16 %v542_v26, %v541_v25  ;;  %p1195_p0 = scmp.ne.s32.totalorder %s913_s17, %s1194_s11  ;;  %p1200_p2 = scmp.lt.s32.totalorder %s1198_s1, %s1194_s11 }
   0xc   :  { %1102 = vmatprep.subr.bf16.mxu0 %v1101_v20 }
   0xd   :  { %p1201_p3 = por %p1200_p2, %p1199_p1 }
   0xe   :  { %1116 = vmatpush3.bf16.msra.mxu1 %v1113_v28  ;;  %v633_v28 = vld [vmem:[%s1475_s9] sm:$0xff] }
   0xf   :  { %1104 = vmatpush3.bf16.msra.mxu0 %v1101_v20  ;;  %v539_v20 = vld [vmem:[%s1473_s7] sm:$0xff]  ;;  %p1202_p4 = pnand %p1201_p3, %p1195_p0 }
  0x10   :  { %1106 = vmatprep.subr.bf16.mxu0 %v1105_v29  ;;  %v1135_v22 = vpack.c.bf16 %v540_v21, %v539_v20 }
  0x13   :  { %1108 = vmatpush3.bf16.msra.mxu0 %v1105_v29  ;;  %v634_v29 = vld [vmem:[%s1475_s9 + $0x8] sm:$0xff] }
  0x82   :  { %v56_v31 = vpop.permute.xlu0 %55 }
  0x83   :  { %vm60_vm2 = vcmp.eq.s32.totalorder %v53_v30, %v56_v31  ;;  %v1143_v31 = vpack.c.bf16 %v634_v29, %v633_v28 }
  0x84   :  { %v921_v32 = vsel %vm60_vm2, 1.0, %v1219_v10 }
  0x85   :  { %1012 = vmatprep.mubr.msk.f32.mxu0 %vm74_vm1, %v921_v32  ;;  %v636_v32 = vld [vmem:[%s1475_s9 + $0x18] sm:$0xff] }
  0x86   :  { %v59_v33 = vpop.permute.xlu0 %58 }
  0x87   :  { %vm61_vm3 = vcmp.eq.s32.totalorder %v53_v30, %v59_v33  ;;  %v635_v30 = vld [vmem:[%s1475_s9 + $0x10] sm:$0xff] }
  0x88   :  { %v922_v34 = vsel %vm61_vm3, 1.0, %v1219_v10  ;;  %v1147_v33 = vpack.c.bf16 %v636_v32, %v635_v30 }
  0x89   :  { %1013 = vmatmul.mubr.msk.f32.vlgmr.msra.gmra.mrb[0].mxu0 %vm74_vm1, %v922_v34  ;;  %v637_v34 = vld [vmem:[%s1475_s9 + $0x20] sm:$0xff] }
 0x15c   :  { %v1349_v35 = vpop.f32.mrb[0].mxu0 }
 0x15d   :  { %v1351_v36 = vpop.f32.mrb[1].mxu0 }
 0x15e   :  { %1023 = vmatprep.mubr.msk.f32.mxu1 %vm160_vm4, %v1351_v36 }
 0x15f   :  { %1024 = vmatmul.mubr.msk.f32.vlgmr.msra.gmra.mrb[0].mxu1 %vm160_vm4, %v1349_v35 }
 0x232   :  { %v1025_v37 = vpop.f32.mrb[0].mxu1 }
 0x233   :  { %v233_v38 = vpop.f32.mrb[1].mxu1 }
 0x234   :  { %v1175_v39 = vpack.i.bf16 %v1025_v37, %v233_v38  ;;  %1030 = vmatprep.mubr.msk.f32.mxu1 %vm160_vm4, %v233_v38 }
 0x236   :  { %1171 = vrot.lane.b32.xlu1 %v1175_v39, %s1220_s4 }
 0x2a8   :  { %v1172_v40 = vpop.permute.xlu1 %1171 }
 0x2a9   :  { %v1174_v41 = vunpack.i.h.bf16 %v1172_v40  ;;  %v1173_v42 = vunpack.i.l.bf16 %v1172_v40 }
 0x2ab   :  { %v1117_v43 = vpack.c.bf16 %v1174_v41, %v1173_v42 }
 0x2ad   :  { %1119 = vmatprep.subr.msk.bf16.mxu1 %vm1118_vm5, %v1117_v43 }
 0x2ae   :  { %1122 = vmatpush3.bf16.xpose.msk.msra.mxu1 %vm1118_vm5, %v1117_v43  ;;  %v639_v43 = vld [vmem:[%s1475_s9 + $0x30] sm:$0xff] }
 0x2af   :  { %1128 = vmatprep.subr.bf16.mxu1 %v1127_v5 }
 0x2b5   :  { %1031 = vmatmul.mubr.msk.f32.vlgmr.msra.gmra.mrb[2].mxu1 %vm160_vm4, %v1025_v37  ;;  %v638_v37 = vld [vmem:[%s1475_s9 + $0x28] sm:$0xff] }
 0x2b6   :  { %1130 = vmatpush3.bf16.msra.mxu1 %v1127_v5  ;;  %v1151_v38 = vpack.c.bf16 %v638_v37, %v637_v34  ;;  %v821_v5 = vstv %s1478_s12 }
 0x2b7   :  { %1132 = vmatprep.subr.bf16.mxu1 %v1131_v7 }
 0x2ba   :  { %1134 = vmatpush3.bf16.msra.mxu1 %v1131_v7 }
 0x2bb   :  { %1144 = vmatprep.subr.bf16.mxu1 %v1143_v31 }
 0x388   :  { %v1032_v44 = vpop.f32.mrb[2].mxu1 }
 0x389   :  { %v332_v46 = vmul.f32 0.17677669, %v1032_v44  ;;  %v322_v47 = vpop.f32.mrb[3].mxu1  ;;  %v640_v44 = vld [vmem:[%s1475_s9 + $0x38] sm:$0xff] }
 0x38a   :  { %v331_v49 = vmul.f32 0.17677669, %v322_v47 }
 0x38b   :  { %v336_v50 = vadd.f32 %v334_v45, %v332_v46  ;;  %v1155_v45 = vpack.c.bf16 %v640_v44, %v639_v43 }
 0x38c   :  { %v335_v51 = vadd.f32 %v333_v48, %v331_v49 }
 0x38d   :  { %v343_v52 = vsel %vm341_vm6, %v336_v50, -1e+30 }
 0x38e   :  { %v348_v53 = vsel %vm344_vm7, %v343_v52, -inf  ;;  %v342_v54 = vsel %vm341_vm6, %v335_v51, -1e+30  ;;  %v731_v51 = vld [vmem:[%s1469_s3] sm:$0x3] }
 0x38f   :  { %349 = vmax.xlane.f32.xlu0 %v348_v53  ;;  %v345_v55 = vsel %vm344_vm7, %v342_v54, -inf  ;;  %v738_v53 = vmul.f32 %v1325_v19, %v731_v51 }
 0x390   :  { %346 = vmax.xlane.f32.xlu1 %v345_v55  ;;  %v938_v55 = vld [vmem:[%s1476_s10] ss:$0 sm:$0xff] }
 0x41c   :  { %v350_v56 = vpop.xlane.xlu0 %349 }
 0x41d   :  { %v352_v57 = vsub.f32 %v343_v52, %v350_v56  ;;  %v347_v58 = vpop.xlane.xlu1 %346  ;;  %v1222_v52 = vmov 0.0|0.0  }
 0x41e   :  { %v351_v59 = vsub.f32 %v342_v54, %v347_v58  ;;  %v813_v54 = vsel %vm812_vm9, %v738_v53, 0.0 }
 0x41f   :  { %v355_v60 = vmul.f32 1.442695, %v352_v57 }
 0x420   :  { %v353_v61 = vmul.f32 1.442695, %v351_v59 }
 0x421   :  { %1180 = vpow2.f32 %v355_v60 }
 0x422   :  { %1182 = vpow2.f32 %v353_v61 }
 0x42b   :  { %v1181_v62 = vpop.eup %1180 }
 0x42c   :  { %v1183_v63 = vpop.eup %1182  ;;  %v360_v0 = vsel %vm344_vm7, %v1181_v62, 0.0 }
 0x42d   :  { %361 = vadd.xlane.f32.xlu1 %v360_v0  ;;  %v357_v1 = vsel %vm344_vm7, %v1183_v63, 0.0 }
 0x42e   :  { %358 = vadd.xlane.f32.xlu0 %v357_v1 }
 0x431   :  { %814 = vadd.xlane.f32.xlu1 %v813_v54 }
 0x444   :  { %1176 = vrot.lane.b32.xlu0 %v1175_v39, %s1221_s2 }
 0x4ba   :  { %v362_v8 = vpop.xlane.xlu1 %361 }
 0x4bb   :  { %1184 = vrcp.f32 %v362_v8  ;;  %v359_v9 = vpop.xlane.xlu0 %358 }
 0x4bc   :  { %1186 = vrcp.f32 %v359_v9 }
 0x4be   :  { %v815_v19 = vpop.xlane.xlu1 %814 }
 0x4bf   :  { %v1177_v11 = vpop.permute.xlu0 %1176 }
 0x4c0   :  { %v1179_v12 = vunpack.i.h.bf16 %v1177_v11  ;;  %v1178_v13 = vunpack.i.l.bf16 %v1177_v11 }
 0x4c2   :  { %v1123_v14 = vpack.c.bf16 %v1179_v12, %v1178_v13 }
 0x4c4   :  { %1124 = vmatprep.subr.bf16.mxu0 %v1123_v14 }
 0x4c5   :  { %v1185_v15 = vpop.eup %1184  ;;  %1126 = vmatpush3.bf16.msra.mxu0 %v1123_v14 }
 0x4c6   :  { %v1187_v16 = vpop.eup %1186  ;;  %v366_v18 = vmul.f32 %v1185_v15, %v1181_v62  ;;  %1136 = vmatprep.subr.bf16.mxu0 %v1135_v22 }
 0x4c7   :  { %v364_v17 = vmul.f32 %v1187_v16, %v1183_v63  ;;  %v816_v63 = vmax.f32 %v815_v19, 1.0 }
 0x4c9   :  { %1037 = vmatprep.mubr.msk.f32.mxu0 %vm344_vm7, %v364_v17  ;;  %1188 = vrcp.f32 %v816_v63 }
 0x4ca   :  { %1038 = vmatmul.mubr.msk.f32.vlgmr.msra.gmra.mrb[2].mxu0 %vm344_vm7, %v366_v18 }
 0x4cb   :  { %1138 = vmatpush3.bf16.msra.mxu0 %v1135_v22 }
 0x4cc   :  { %1140 = vmatprep.subr.bf16.mxu0 %v1139_v27 }
 0x4cf   :  { %1142 = vmatpush3.bf16.msra.mxu0 %v1139_v27 }
 0x4d0   :  { %1159 = vmatprep.subr.bf16.mxu0 %v1222_v52 }
 0x4d3   :  { %v1189_v0 = vpop.eup %1188 }
 0x59d   :  { %v1039_v23 = vpop.f32.mrb[2].mxu0 }
 0x59e   :  { %v445_v24 = vpop.f32.mrb[3].mxu0 }
 0x59f   :  { %1048 = vmatprep.mubr.msk.f32.mxu1 %vm160_vm4, %v445_v24 }
 0x5a0   :  { %1049 = vmatmul.mubr.msk.f32.vlgmr.msra.gmra.mrb[4].mxu1 %vm160_vm4, %v1039_v23 }
 0x5a1   :  { %1146 = vmatpush3.bf16.msra.mxu1 %v1143_v31 }
 0x5a2   :  { %1148 = vmatprep.subr.bf16.mxu1 %v1147_v33 }
 0x5a5   :  { %1150 = vmatpush3.bf16.msra.mxu1 %v1147_v33 }
 0x5a6   :  { %1152 = vmatprep.subr.bf16.mxu1 %v1151_v38 }
 0x5a9   :  { %1154 = vmatpush3.bf16.msra.mxu1 %v1151_v38 }
 0x5aa   :  { %1156 = vmatprep.subr.bf16.mxu1 %v1155_v45 }
 0x5ad   :  { %1158 = vmatpush3.bf16.msra.mxu1 %v1155_v45 }
 0x673   :  { %v1050_v39 = vpop.f32.mrb[4].mxu1 }
 0x674   :  { %v536_v40 = vadd.f32 %v1050_v39, %v1349_v35  ;;  %v530_v41 = vpop.f32.mrb[5].mxu1  ;;  %v935_v35 = vld [vmem:[%s1474_s8] ss:$0 sm:$0xff] }
 0x675   :  { %v531_v42 = vadd.f32 %v530_v41, %v1351_v36 }
 0x677   :  { %1059 = vmatprep.mubr.msk.f32.mxu0 %vm160_vm4, %v531_v42 }
 0x678   :  { %1060 = vmatmul.mubr.msk.f32.vlgmr.msra.gmra.mrb[4].mxu0 %vm160_vm4, %v536_v40 }
 0x679   :  { %1085 = vmatprep.mubr.msk.f32.mxu0 %vm1223_vm8, %v1219_v10 }
 0x74b   :  { %v1061_v36 = vpop.f32.mrb[4].mxu0 }
 0x74c   :  { %v628_v46 = vadd.f32 %v1061_v36, %v935_v35  ;;  %v622_v47 = vpop.f32.mrb[5].mxu0 }
 0x74d   :  { %v623_v48 = vadd.f32 %v935_v35, %v622_v47 }
 0x74e   :  { %v632_v50 = vmax.f32 %v628_v46, 0.0 }
 0x74f   :  { %v631_v49 = vmax.f32 %v623_v48, 0.0 }
 0x751   :  { %1078 = vmatprep.mubr.msk.f32.mxu1 %vm74_vm1, %v631_v49 }
 0x752   :  { %1079 = vmatmul.mubr.msk.f32.vlgmr.msra.gmra.mrb[6].mxu1 %vm74_vm1, %v632_v50 }
 0x825   :  { %v1080_v56 = vpop.f32.mrb[6].mxu1 }
 0x826   :  { %v726_v57 = vadd.f32 %v1080_v56, %v938_v55  ;;  %v720_v58 = vpop.f32.mrb[7].mxu1 }
 0x827   :  { %v721_v59 = vadd.f32 %v938_v55, %v720_v58 }
 0x828   :  { %v730_v60 = vadd.f32 %v726_v57, %v536_v40 }
 0x829   :  { %v729_v61 = vadd.f32 %v721_v59, %v531_v42 }
 0x82b   :  { %v1160_v62 = vpack.c.bf16 %v730_v60, %v729_v61 }
 0x82d   :  { %1161 = vmatpush3.bf16.msra.mxu0 %v1160_v62 }
 0x82e   :  { %1088 = vmatprep.subr.mxu0 %v1219_v10 }
 0x830   :  { %1086 = vmatmul.mubr.msk.f32.vlgmr.msra.gmra.mrb[6].mxu0 %vm344_vm7, %v738_v53 }
 0x831   :  { %1090 = vmatprep.mubr.msk.f32.mxu0 %vm1223_vm8, %v1219_v10 }
 0x903   :  { %v808_v1 = vpop.f32.mrb[6].mxu0 }
 0x904   :  { %v818_v2 = vmul.f32 %v1189_v0, %v808_v1  ;;  %v1087_v3 = vpop.f32.mrb[7].mxu0 }
 0x906   :  { %1089 = vmatpush3.xpose.msk.msra.mxu0 %vm160_vm4, %v818_v2 }
 0x909   :  { %1091 = vmatmul.mubr.msk.f32.vlgmr.msra.gmra.mrb[8].mxu0 %vm160_vm4, %v819_v4 }
 0x9dc   :  { %v894_v10 = vpop.f32.mrb[8].mxu0 }
 0x9dd   :  { %v895_v6 = vadd.f32 %v894_v10, %v821_v5  ;;  %v1092_v7 = vpop.f32.mrb[9].mxu0 }
 0x9df   :  { %v944_v8 = vmul.f32 -1.442695, %v895_v6 }
 0x9e1   :  { %1190 = vpow2.f32 %v944_v8 }
 0x9eb   :  { %v1191_v9 = vpop.eup %1190 }
 0x9ec   :  { %v901_v11 = vadd.f32 1.0, %v1191_v9 }
 0x9ee   :  { %1192 = vrcp.f32 %v901_v11 }
 0x9f8   :  { %v1193_v12 = vpop.eup %1192 }
 0x9f9   :  { %905 = vst.msk [vmem:[#allocation3] sm:$0x1] %vm904_vm10, %v1193_v12 }
 0x9fa   :  { %1205 = shalt.err (!%p1202_p4)
}
 0x9fb   :  { %s1206_s5 = scalar_lea.hbm %s1479_s13, 16 }
 0x9fc   :  { %p1207_p5 = scmp.ne.s32.totalorder %s1479_s13, %s1206_s5  ;;  %p1210_p6 = scmp.lt.u32.totalorder %s1206_s5, %s1479_s13 }
 0x9fe   :  { %p1212_p7 = pnand %p1210_p6, %p1207_p5 }
 0xa00   :  { %1215 = shalt.err (!%p1212_p7)
}
 0xa01   :  { %915 = dma.vmem_to_hbm [thread:$0]  %s913_s17, 16, %s1479_s13, [#allocation4]  }
 0xa02   :  { %1216 = dma.done.wait [#allocation4], 16  }
 0xa03   :  { %1217 = vsyncadd [#allocation4], 4294967280 }
 0xa04   :  { %919 = vsyncpa [#allocation4], 1 }

</bundles_post_ra>
